<compile_context>
chip_gen: v6e
topology: v6e:2x2x1
jax: 0.10.0
libtpu: 0.0.40
codegen_flags: <defaults>
</compile_context>

<pallas_src>
import numpy as np
import jax
import jax.numpy as jnp
from jax.experimental import pallas as pl
from jax.experimental.pallas import tpu as pltpu


def make_pos_enc_table(max_seq_len: int, d_model: int) -> jnp.ndarray:
    """Deterministic sinusoidal table, exactly as in the PyTorch __init__."""
    pos_enc = np.array(
        [
            [pos / np.power(10000, 2.0 * (j // 2) / d_model) for j in range(d_model)]
            for pos in range(max_seq_len)
        ]
    )
    pos_enc[:, 0::2] = np.sin(pos_enc[:, 0::2])
    pos_enc[:, 1::2] = np.cos(pos_enc[:, 1::2])
    return jnp.asarray(pos_enc.astype(np.float32))


def _make_dma_copy_kernel(rows_per_step: int):
    """Kernel: DMA `rows_per_step` contiguous table rows HBM->HBM per grid step."""

    def kernel(table_hbm, out_hbm, sem):
        # table_hbm : HBM ref [max_seq_len, d_model]  (memory_space=pl.ANY)
        # out_hbm   : HBM ref [seq, d_model]          (memory_space=pl.ANY)
        start = pl.program_id(0) * rows_per_step  # disjoint row ranges per step
        cp = pltpu.make_async_copy(
            table_hbm.at[pl.ds(start, rows_per_step), :],
            out_hbm.at[pl.ds(start, rows_per_step), :],
            sem,
        )
        cp.start()
        cp.wait()

    return kernel


def pos_encoding_forward(input_len, pos_enc_table: jnp.ndarray) -> jnp.ndarray:
    """Equivalent of PosEncoding.forward(input_len).

    input_len: int array [batch]. As in the reference module every entry must be
    equal (the torch forward would otherwise build a ragged tensor); this is
    asserted on the host.  The sequence length is a host-side value (the torch
    code builds `range(len)` on the host too), so this wrapper is not
    jit-traceable over dynamic lengths.
    Returns [batch, seq, d_model] float32.
    """
    input_len_host = np.asarray(input_len)
    batch = int(input_len_host.shape[0])
    assert np.all(input_len_host == input_len_host[0]), (
        "PosEncoding contract: all batch entries of input_len must be equal"
    )
    seq = int(input_len_host[0])
    max_seq_len, d_model = pos_enc_table.shape
    assert 0 < seq <= max_seq_len, "positions exceed embedding table"

    # v7x has 2 TensorCores per chip: split the copy into 2 disjoint DMAs when
    # that is cheap (even seq, enough rows) so dimension_semantics=("parallel",)
    # can shard the steps across both cores.  On v5e/v6e (1 TC) the second step
    # is just one more DMA descriptor, near-zero cost.
    nsteps = 2 if (seq >= 16 and seq % 2 == 0) else 1
    rows_per_step = seq // nsteps

    pos_slab = pl.pallas_call(
        _make_dma_copy_kernel(rows_per_step),
        out_shape=jax.ShapeDtypeStruct((seq, d_model), pos_enc_table.dtype),
        grid=(nsteps,),
        in_specs=[pl.BlockSpec(memory_space=pl.ANY)],   # table stays in HBM
        out_specs=pl.BlockSpec(memory_space=pl.ANY),    # written via DMA only
        scratch_shapes=[pltpu.SemaphoreType.DMA],
        compiler_params=pltpu.CompilerParams(
            dimension_semantics=("parallel",),
        ),
    )(pos_enc_table)

    # Batch copies are identical -- broadcast outside the kernel.  NOTE: if the
    # consumer does not fuse this broadcast, XLA materializes a full
    # [batch, seq, d_model] buffer; prefer adding pos_slab directly to the
    # activations (broadcasting) downstream.
    return jnp.broadcast_to(pos_slab[None], (batch, seq, d_model))


if __name__ == "__main__":
    # Small shapes consistent with the module's forward.
    batch = 2
    seq = 8
    max_seq_len = 16
    d_model = 32

    key = jax.random.PRNGKey(0)  # inputs below are deterministic

    pos_enc_table = make_pos_enc_table(max_seq_len, d_model)

    # input_len = [seq, seq, ...]: every batch element has the same length.
    input_len = jnp.full((batch,), seq, dtype=jnp.int32)

    out = pos_encoding_forward(input_len, pos_enc_table)
    out = jax.block_until_ready(out)

    # Pure-JAX reference: embedding lookup of arange positions, broadcast over batch.
    ref = jnp.take(pos_enc_table, jnp.arange(seq), axis=0)
    ref = jnp.broadcast_to(ref[None], (batch, seq, d_model))

    assert out.shape == (batch, seq, d_model)
    assert out.dtype == jnp.float32
    np.testing.assert_allclose(np.asarray(out), np.asarray(ref), rtol=0, atol=0)

    print("KERNEL_OK")
</pallas_src>

<mosaic_0001>
module attributes {stable_mosaic.version = 11 : i64} {
  func.func @kernel(%arg0: i32, %arg1: memref<16x32xf32, #tpu.memory_space<any>>, %arg2: memref<8x32xf32, #tpu.memory_space<any>>, %arg3: memref<!tpu.dma_semaphore, #tpu.memory_space<semaphore_mem>>) attributes {dimension_semantics = [#tpu.dimension_semantics<parallel>], iteration_bounds = array<i64: 1>, scalar_prefetch = 0 : i64, scratch_operands = 1 : i64, tpu.core_type = #tpu.core_type<tc>, window_params = [{}, {}]} {
    %c8_i32 = arith.constant 8 : i32
    %0 = arith.muli %arg0, %c8_i32 : i32
    %c0_i32 = arith.constant 0 : i32
    %1 = tpu.memref_slice %arg1[%0, %c0_i32] : memref<16x32xf32, #tpu.memory_space<any>> -> memref<8x32xf32, #tpu.memory_space<any>>
    %c0_i32_0 = arith.constant 0 : i32
    %2 = tpu.memref_slice %arg2[%0, %c0_i32_0] : memref<8x32xf32, #tpu.memory_space<any>> -> memref<8x32xf32, #tpu.memory_space<any>>
    tpu.enqueue_dma source(%1 : memref<8x32xf32, #tpu.memory_space<any>>) target(%2 : memref<8x32xf32, #tpu.memory_space<any>>) target_semaphore(%arg3 : memref<!tpu.dma_semaphore, #tpu.memory_space<semaphore_mem>>)
    %c0_i32_1 = arith.constant 0 : i32
    %3 = tpu.memref_slice %arg1[%0, %c0_i32_1] : memref<16x32xf32, #tpu.memory_space<any>> -> memref<8x32xf32, #tpu.memory_space<any>>
    %c0_i32_2 = arith.constant 0 : i32
    %4 = tpu.memref_slice %arg2[%0, %c0_i32_2] : memref<8x32xf32, #tpu.memory_space<any>> -> memref<8x32xf32, #tpu.memory_space<any>>
    tpu.wait_dma2 semaphore(%arg3 : memref<!tpu.dma_semaphore, #tpu.memory_space<semaphore_mem>>) src(%3 : memref<8x32xf32, #tpu.memory_space<any>>) dst(%4 : memref<8x32xf32, #tpu.memory_space<any>>)
    return
  }
}

</mosaic_0001>

<bundles_post_ra>
// kernel: tpu_custom_call.1
= control target key start
LH: loop header
LB: loop body
LE: loop exit
PB: predicated region body
PF: predicated region fallthrough
CT: control target
= control target key end

     0   :  { %s33_s6 = smov [#allocation2]   ;;  %s34_s7 = smov 131072   ;;  %s52_s0 = inlined_call_operand.hbm [shape: f32[16,32], index: 0, kind: input, shape index: {}]   ;;  %s53_s1 = inlined_call_operand.hbm [shape: f32[8,32], index: 1, kind: output, shape index: {}]  }
   0x1   :  { %s35_s8 = smov 0  }
   0x2   :  { %17 = dma.general %s52_s0, 128, %s53_s1, %s33_s6, %s34_s7, [#allocation4], %s35_s8, 0  }
   0x3   :  { %31 = dma.done.wait [#allocation2], 128 }
   0x4   :  { %32 = vsyncadd [#allocation2], 4294967168 }
   0x5   :  { %21 = vsyncmov [#allocation2] }
   0x8   :  { %s22_s13 = vpop.sfrf %21 }
   0x9   :  { %p27_p0 = scmp.ne.s32.totalorder %s22_s13, 0 }
   0xb   :  { %26 = shalt.err (%p27_p0)  }

</bundles_post_ra>
